<compile_context>
chip_gen: v5e
topology: v5e:2x2
jax: 0.10.0
libtpu: 0.0.40
codegen_flags: <defaults>
</compile_context>

<pallas_src>
from functools import partial

import jax
import jax.numpy as jnp
from jax.experimental import pallas as pl
from jax.experimental.pallas import tpu as pltpu


def _avwgcn_kernel(cheb_k, x_ref, ste_ref, sterep_ref, r_ref, sc_ref,
                   w2_ref, s_ref, bp_ref, out_ref):
    bt, n, dim_in = x_ref.shape
    et_dim = ste_ref.shape[-1]
    dim_out = out_ref.shape[-1]
    rows = bt * n

    x = x_ref[...]        # (Bt, N, I)  bf16
    R = r_ref[...]        # (Bt, N, N)  bf16
    SC = sc_ref[...]      # (Bt, N, N)  bf16

    # Chebyshev recursion carried on z_k = T_k @ x  (never build T_k).
    z0 = jnp.einsum('bnm,bmi->bni', SC, x, preferred_element_type=jnp.float32)   # T0 = SC
    z1 = jnp.einsum('bnm,bmi->bni', R, x, preferred_element_type=jnp.float32)    # T1 = R
    zs = [z0, z1]
    for _ in range(2, cheb_k):
        zk = 2.0 * jnp.einsum('bnm,bmi->bni', R, zs[-1].astype(jnp.bfloat16),
                              preferred_element_type=jnp.float32) - zs[-2]
        zs.append(zk)

    # (Bt, N, K*I), k-major along the contraction axis (matches W2 row ordering),
    # then collapse batch into the row/sublane axis so one matmul covers Bt*N rows.
    z_cat = jnp.concatenate(zs, axis=-1)                                   # (Bt, N, K*I)
    z2 = z_cat.reshape(rows, cheb_k * dim_in).astype(jnp.bfloat16)         # (rows, K*I)

    ste2 = ste_ref[...].reshape(rows, et_dim)                              # (rows, D)      f32
    ste_rep2 = sterep_ref[...].reshape(rows, et_dim * dim_out)             # (rows, D*O)    f32

    # M[r, d*O + o] = sum_{k,i} z[r, k, i] * W[d, k, i, o]
    M = jnp.dot(z2, w2_ref[...], preferred_element_type=jnp.float32)       # (rows, D*O)
    # P[r, d*O + o] = STE[r, d] * M[r, d*O + o]
    P = ste_rep2 * M
    # Sum over d on the MXU with a static 0/1 selection matrix (no cross-lane relayout).
    acc = jnp.dot(P.astype(jnp.bfloat16), s_ref[...],
                  preferred_element_type=jnp.float32)                      # (rows, O)
    # bias = STE @ bias_pool
    acc = acc + jnp.dot(ste2.astype(jnp.bfloat16), bp_ref[...],
                        preferred_element_type=jnp.float32)

    out_ref[...] = acc.reshape(bt, n, dim_out).astype(out_ref.dtype)


def avwgcn_forward(x, STE, R, SC, weights_pool, bias_pool, *, batch_tile=None):
    B, N, dim_in = x.shape
    et_dim, cheb_k, _, dim_out = weights_pool.shape
    assert cheb_k >= 2, "cheb_k must be >= 2 (reference always stacks [SC, R])"

    if batch_tile is None:
        # Pack ~256 rows (Bt*N) per step to fill MXU rows, but keep >=2 parallel grid
        # steps when possible so both v7x TensorCores get work.
        cap = min(B, max(1, pl.cdiv(256, N)), max(1, B // 2))
        batch_tile = cap
        while B % batch_tile:
            batch_tile -= 1
    Bt = batch_tile
    assert B % Bt == 0
    grid = (B // Bt,)

    bf16 = jnp.bfloat16
    f32 = jnp.float32

    # ---- Host-side (plain XLA) layout prep; all invariant or trivially cheap. ----
    # W2[k*I + i, d*O + o] = weights_pool[d, k, i, o]
    W2 = weights_pool.transpose(1, 2, 0, 3).reshape(cheb_k * dim_in, et_dim * dim_out).astype(bf16)
    # S[d*O + o', o] = 1 iff o' == o   (sum-over-d selection matrix)
    S = jnp.tile(jnp.eye(dim_out, dtype=bf16), (et_dim, 1))
    bp = bias_pool.astype(bf16)
    # STE_rep[..., d*O + o] = STE[..., d]
    STE_rep = jnp.repeat(STE.astype(f32), dim_out, axis=-1)
    STE_f = STE.astype(f32)
    x_b, R_b, SC_b = x.astype(bf16), R.astype(bf16), SC.astype(bf16)

    flops = 2 * B * (cheb_k * N * N * dim_in
                     + N * (cheb_k * dim_in) * (et_dim * dim_out)
                     + N * (et_dim * dim_out) * dim_out
                     + N * et_dim * dim_out)
    bytes_accessed = int(x_b.size * 2 + R_b.size * 2 + SC_b.size * 2
                         + STE_f.size * 4 + STE_rep.size * 4
                         + W2.size * 2 + S.size * 2 + bp.size * 2
                         + B * N * dim_out * 4)

    kernel = partial(_avwgcn_kernel, cheb_k)

    return pl.pallas_call(
        kernel,
        out_shape=jax.ShapeDtypeStruct((B, N, dim_out), jnp.float32),
        grid_spec=pltpu.PrefetchScalarGridSpec(
            num_scalar_prefetch=0,
            grid=grid,
            in_specs=[
                pl.BlockSpec((Bt, N, dim_in), lambda g: (g, 0, 0)),
                pl.BlockSpec((Bt, N, et_dim), lambda g: (g, 0, 0)),
                pl.BlockSpec((Bt, N, et_dim * dim_out), lambda g: (g, 0, 0)),
                pl.BlockSpec((Bt, N, N), lambda g: (g, 0, 0)),
                pl.BlockSpec((Bt, N, N), lambda g: (g, 0, 0)),
                pl.BlockSpec((cheb_k * dim_in, et_dim * dim_out), lambda g: (0, 0)),
                pl.BlockSpec((et_dim * dim_out, dim_out), lambda g: (0, 0)),
                pl.BlockSpec((et_dim, dim_out), lambda g: (0, 0)),
            ],
            out_specs=pl.BlockSpec((Bt, N, dim_out), lambda g: (g, 0, 0)),
        ),
        compiler_params=pltpu.CompilerParams(
            dimension_semantics=("parallel",),
            vmem_limit_bytes=32 * 1024 * 1024,
        ),
        cost_estimate=pl.CostEstimate(flops=flops, transcendentals=0,
                                      bytes_accessed=bytes_accessed),
    )(x_b, STE_f, STE_rep, R_b, SC_b, W2, S, bp)


def _reference(x, STE, R, SC, weights_pool, bias_pool, cheb_k):
    bias = jnp.matmul(STE, bias_pool)
    T = [SC, R]
    for _ in range(2, cheb_k):
        T.append(jnp.matmul(2.0 * R, T[-1]) - T[-2])
    R_set = jnp.stack(T, axis=0).transpose(1, 2, 0, 3)   # (B, N, K, N)
    out = jnp.einsum('bnkm,bmi,bnd,dkio->bno', R_set, x, STE, weights_pool) + bias
    return out


if __name__ == "__main__":
    B, N = 2, 16
    dim_in, dim_out = 4, 8
    cheb_k, et_dim = 3, 10

    key = jax.random.PRNGKey(0)
    k_x, k_ste, k_r, k_sc, k_w, k_b = jax.random.split(key, 6)

    x = jax.random.normal(k_x, (B, N, dim_in), dtype=jnp.float32)
    STE = jax.random.normal(k_ste, (B, N, et_dim), dtype=jnp.float32)
    R = jax.random.normal(k_r, (B, N, N), dtype=jnp.float32) * 0.1
    SC = jax.random.normal(k_sc, (B, N, N), dtype=jnp.float32) * 0.1
    weights_pool = jax.random.normal(k_w, (et_dim, cheb_k, dim_in, dim_out), dtype=jnp.float32) * 0.1
    bias_pool = jax.random.normal(k_b, (et_dim, dim_out), dtype=jnp.float32) * 0.1

    out = jax.block_until_ready(avwgcn_forward(x, STE, R, SC, weights_pool, bias_pool))
    ref = _reference(x, STE, R, SC, weights_pool, bias_pool, cheb_k)

    assert out.shape == (B, N, dim_out)
    # bf16 MXU inputs with f32 accumulation -> slightly looser tolerance than pure f32.
    assert jnp.allclose(out, ref, atol=5e-2, rtol=5e-2), "mismatch vs reference"

    print("KERNEL_OK")
</pallas_src>

<mosaic_0001>
module attributes {stable_mosaic.version = 11 : i64} {
  func.func @_avwgcn_kernel(%arg0: i32, %arg1: memref<1x16x4xbf16, #tpu.memory_space<vmem>>, %arg2: memref<1x16x10xf32, #tpu.memory_space<vmem>>, %arg3: memref<1x16x80xf32, #tpu.memory_space<vmem>>, %arg4: memref<1x16x16xbf16, #tpu.memory_space<vmem>>, %arg5: memref<1x16x16xbf16, #tpu.memory_space<vmem>>, %arg6: memref<12x80xbf16, #tpu.memory_space<vmem>>, %arg7: memref<80x8xbf16, #tpu.memory_space<vmem>>, %arg8: memref<10x8xbf16, #tpu.memory_space<vmem>>, %arg9: memref<1x16x8xf32, #tpu.memory_space<vmem>>) attributes {dimension_semantics = [#tpu.dimension_semantics<parallel>], iteration_bounds = array<i64: 2>, scalar_prefetch = 0 : i64, scratch_operands = 0 : i64, tpu.core_type = #tpu.core_type<tc>, window_params = [{transform_indices = @transform_0, window_bounds = array<i64: 1, 16, 4>}, {transform_indices = @transform_1, window_bounds = array<i64: 1, 16, 10>}, {transform_indices = @transform_2, window_bounds = array<i64: 1, 16, 80>}, {transform_indices = @transform_3, window_bounds = array<i64: 1, 16, 16>}, {transform_indices = @transform_4, window_bounds = array<i64: 1, 16, 16>}, {pipeline_mode = #tpu.pipeline_mode<synchronous>, transform_indices = @transform_5, window_bounds = array<i64: 12, 80>}, {pipeline_mode = #tpu.pipeline_mode<synchronous>, transform_indices = @transform_6, window_bounds = array<i64: 80, 8>}, {pipeline_mode = #tpu.pipeline_mode<synchronous>, transform_indices = @transform_7, window_bounds = array<i64: 10, 8>}, {transform_indices = @transform_8, window_bounds = array<i64: 1, 16, 8>}]} {
    %c0 = arith.constant 0 : index
    %c0_0 = arith.constant 0 : index
    %c0_1 = arith.constant 0 : index
    %0 = vector.load %arg1[%c0, %c0_0, %c0_1] : memref<1x16x4xbf16, #tpu.memory_space<vmem>>, vector<1x16x4xbf16>
    %c0_2 = arith.constant 0 : index
    %c0_3 = arith.constant 0 : index
    %c0_4 = arith.constant 0 : index
    %1 = vector.load %arg4[%c0_2, %c0_3, %c0_4] : memref<1x16x16xbf16, #tpu.memory_space<vmem>>, vector<1x16x16xbf16>
    %c0_5 = arith.constant 0 : index
    %c0_6 = arith.constant 0 : index
    %c0_7 = arith.constant 0 : index
    %2 = vector.load %arg5[%c0_5, %c0_6, %c0_7] : memref<1x16x16xbf16, #tpu.memory_space<vmem>>, vector<1x16x16xbf16>
    "tpu.trace_start"() <{level = 10 : i32, message = "bnm,bmi->bni"}> : () -> ()
    %cst = arith.constant dense<0.000000e+00> : vector<1x16x4xf32>
    %3 = tpu.matmul %2, %0, %cst {dimension_numbers = #tpu.dot_dimension_numbers<[2], [1], [1], [2], [0, 0, 0, 1, 1, 2], [0], [0]>} : vector<1x16x16xbf16>, vector<1x16x4xbf16>, vector<1x16x4xf32> -> vector<1x16x4xf32>
    %cst_8 = arith.constant dense<0.000000e+00> : vector<1x16x4xf32>
    %4 = tpu.matmul %1, %0, %cst_8 {dimension_numbers = #tpu.dot_dimension_numbers<[2], [1], [1], [2], [0, 0, 0, 1, 1, 2], [0], [0]>} : vector<1x16x16xbf16>, vector<1x16x4xbf16>, vector<1x16x4xf32> -> vector<1x16x4xf32>
    "tpu.trace_stop"() : () -> ()
    %5 = arith.truncf %4 : vector<1x16x4xf32> to vector<1x16x4xbf16>
    "tpu.trace_start"() <{level = 10 : i32, message = "bnm,bmi->bni"}> : () -> ()
    %cst_9 = arith.constant dense<0.000000e+00> : vector<1x16x4xf32>
    %6 = tpu.matmul %1, %5, %cst_9 {dimension_numbers = #tpu.dot_dimension_numbers<[2], [1], [1], [2], [0, 0, 0, 1, 1, 2], [0], [0]>} : vector<1x16x16xbf16>, vector<1x16x4xbf16>, vector<1x16x4xf32> -> vector<1x16x4xf32>
    "tpu.trace_stop"() : () -> ()
    %cst_10 = arith.constant 2.000000e+00 : f32
    %7 = vector.broadcast %cst_10 : f32 to vector<1x16x4xf32>
    %8 = arith.mulf %7, %6 : vector<1x16x4xf32>
    %9 = arith.subf %8, %3 : vector<1x16x4xf32>
    %10 = tpu.concatenate %3, %4, %9 in 2 : vector<1x16x4xf32>, vector<1x16x4xf32>, vector<1x16x4xf32> -> vector<1x16x12xf32>
    %11 = vector.shape_cast %10 : vector<1x16x12xf32> to vector<16x12xf32>
    %12 = arith.truncf %11 : vector<16x12xf32> to vector<16x12xbf16>
    %c0_11 = arith.constant 0 : index
    %c0_12 = arith.constant 0 : index
    %c0_13 = arith.constant 0 : index
    %13 = vector.load %arg2[%c0_11, %c0_12, %c0_13] : memref<1x16x10xf32, #tpu.memory_space<vmem>>, vector<1x16x10xf32>
    %14 = vector.shape_cast %13 : vector<1x16x10xf32> to vector<16x10xf32>
    %c0_14 = arith.constant 0 : index
    %c0_15 = arith.constant 0 : index
    %c0_16 = arith.constant 0 : index
    %15 = vector.load %arg3[%c0_14, %c0_15, %c0_16] : memref<1x16x80xf32, #tpu.memory_space<vmem>>, vector<1x16x80xf32>
    %16 = vector.shape_cast %15 : vector<1x16x80xf32> to vector<16x80xf32>
    %c0_17 = arith.constant 0 : index
    %c0_18 = arith.constant 0 : index
    %17 = vector.load %arg6[%c0_17, %c0_18] : memref<12x80xbf16, #tpu.memory_space<vmem>>, vector<12x80xbf16>
    %cst_19 = arith.constant dense<0.000000e+00> : vector<16x80xf32>
    %18 = tpu.matmul %12, %17, %cst_19 {dimension_numbers = #tpu.dot_dimension_numbers<[1], [0], [0], [1], [0, 0, 1, 1], [], []>} : vector<16x12xbf16>, vector<12x80xbf16>, vector<16x80xf32> -> vector<16x80xf32>
    %19 = arith.mulf %16, %18 : vector<16x80xf32>
    %20 = arith.truncf %19 : vector<16x80xf32> to vector<16x80xbf16>
    %c0_20 = arith.constant 0 : index
    %c0_21 = arith.constant 0 : index
    %21 = vector.load %arg7[%c0_20, %c0_21] : memref<80x8xbf16, #tpu.memory_space<vmem>>, vector<80x8xbf16>
    %cst_22 = arith.constant dense<0.000000e+00> : vector<16x8xf32>
    %22 = tpu.matmul %20, %21, %cst_22 {dimension_numbers = #tpu.dot_dimension_numbers<[1], [0], [0], [1], [0, 0, 1, 1], [], []>} : vector<16x80xbf16>, vector<80x8xbf16>, vector<16x8xf32> -> vector<16x8xf32>
    %23 = arith.truncf %14 : vector<16x10xf32> to vector<16x10xbf16>
    %c0_23 = arith.constant 0 : index
    %c0_24 = arith.constant 0 : index
    %24 = vector.load %arg8[%c0_23, %c0_24] : memref<10x8xbf16, #tpu.memory_space<vmem>>, vector<10x8xbf16>
    %cst_25 = arith.constant dense<0.000000e+00> : vector<16x8xf32>
    %25 = tpu.matmul %23, %24, %cst_25 {dimension_numbers = #tpu.dot_dimension_numbers<[1], [0], [0], [1], [0, 0, 1, 1], [], []>} : vector<16x10xbf16>, vector<10x8xbf16>, vector<16x8xf32> -> vector<16x8xf32>
    %26 = arith.addf %22, %25 : vector<16x8xf32>
    %27 = vector.shape_cast %26 : vector<16x8xf32> to vector<1x16x8xf32>
    %c0_26 = arith.constant 0 : index
    %c0_27 = arith.constant 0 : index
    %c0_28 = arith.constant 0 : index
    %28 = vector.load %arg9[%c0_26, %c0_27, %c0_28] : memref<1x16x8xf32, #tpu.memory_space<vmem>>, vector<1x16x8xf32>
    tpu.vector_store %arg9[%c0_26, %c0_27, %c0_28], %27 {strides = array<i32>} : memref<1x16x8xf32, #tpu.memory_space<vmem>>, vector<1x16x8xf32>,
    return
  }
  func.func @transform_0(%arg0: i32) -> (i32, i32, i32) {
    %c0_i32 = arith.constant 0 : i32
    %c0_i32_0 = arith.constant 0 : i32
    %c0_i32_1 = arith.constant 0 : i32
    return %arg0, %c0_i32, %c0_i32_0 : i32, i32, i32
  }
  func.func @transform_1(%arg0: i32) -> (i32, i32, i32) {
    %c0_i32 = arith.constant 0 : i32
    %c0_i32_0 = arith.constant 0 : i32
    %c0_i32_1 = arith.constant 0 : i32
    return %arg0, %c0_i32, %c0_i32_0 : i32, i32, i32
  }
  func.func @transform_2(%arg0: i32) -> (i32, i32, i32) {
    %c0_i32 = arith.constant 0 : i32
    %c0_i32_0 = arith.constant 0 : i32
    %c0_i32_1 = arith.constant 0 : i32
    return %arg0, %c0_i32, %c0_i32_0 : i32, i32, i32
  }
  func.func @transform_3(%arg0: i32) -> (i32, i32, i32) {
    %c0_i32 = arith.constant 0 : i32
    %c0_i32_0 = arith.constant 0 : i32
    %c0_i32_1 = arith.constant 0 : i32
    return %arg0, %c0_i32, %c0_i32_0 : i32, i32, i32
  }
  func.func @transform_4(%arg0: i32) -> (i32, i32, i32) {
    %c0_i32 = arith.constant 0 : i32
    %c0_i32_0 = arith.constant 0 : i32
    %c0_i32_1 = arith.constant 0 : i32
    return %arg0, %c0_i32, %c0_i32_0 : i32, i32, i32
  }
  func.func @transform_5(%arg0: i32) -> (i32, i32) {
    %c0_i32 = arith.constant 0 : i32
    %c0_i32_0 = arith.constant 0 : i32
    %c0_i32_1 = arith.constant 0 : i32
    return %c0_i32, %c0_i32_0 : i32, i32
  }
  func.func @transform_6(%arg0: i32) -> (i32, i32) {
    %c0_i32 = arith.constant 0 : i32
    %c0_i32_0 = arith.constant 0 : i32
    %c0_i32_1 = arith.constant 0 : i32
    return %c0_i32, %c0_i32_0 : i32, i32
  }
  func.func @transform_7(%arg0: i32) -> (i32, i32) {
    %c0_i32 = arith.constant 0 : i32
    %c0_i32_0 = arith.constant 0 : i32
    %c0_i32_1 = arith.constant 0 : i32
    return %c0_i32, %c0_i32_0 : i32, i32
  }
  func.func @transform_8(%arg0: i32) -> (i32, i32, i32) {
    %c0_i32 = arith.constant 0 : i32
    %c0_i32_0 = arith.constant 0 : i32
    %c0_i32_1 = arith.constant 0 : i32
    return %arg0, %c0_i32, %c0_i32_0 : i32, i32, i32
  }
}

</mosaic_0001>

<bundles_post_ra>
// kernel: tpu_custom_call.1
= control target key start
LH: loop header
LB: loop body
LE: loop exit
PB: predicated region body
PF: predicated region fallthrough
CT: control target
= control target key end

     0   :  { %s878_s27 = smov 0   ;;  %s947_s0 = inlined_call_operand.vmem [shape: bf16[2,16,4], index: 0, kind: input, shape index: {}]   ;;  %s948_s1 = inlined_call_operand.vmem [shape: f32[2,16,10], index: 1, kind: input, shape index: {}]   ;;  %s949_s2 = inlined_call_operand.vmem [shape: f32[2,16,80], index: 2, kind: input, shape index: {}]   ;;  %s950_s3 = inlined_call_operand.vmem [shape: bf16[2,16,16], index: 3, kind: input, shape index: {}]   ;;  %s951_s4 = inlined_call_operand.vmem [shape: bf16[2,16,16], index: 4, kind: input, shape index: {}]   ;;  %s952_s5 = inlined_call_operand.vmem [shape: bf16[12,80], index: 5, kind: input, shape index: {}]   ;;  %s953_s6 = inlined_call_operand.vmem [shape: bf16[80,8], index: 6, kind: input, shape index: {}]   ;;  %s954_s7 = inlined_call_operand.vmem [shape: bf16[10,8], index: 7, kind: input, shape index: {}]   ;;  %s955_s8 = inlined_call_operand.vmem [shape: f32[2,16,8], index: 8, kind: output, shape index: {}]  }
   0x1 LB: > { %s722_s28 = sadd.s32 4294967295, %s829_s27   ;;  %p726_p0 = scmp.ge.s32.totalorder %s829_s27, 1  ;;  %s829_s27 = sphi %s878_s27, %s18_s27  }
   0x2   : > { %p302_p1 = scmp.lt.s32.totalorder %s829_s27, 3 }
   0x4   : > { %p303_p2 = pnand %p726_p0, %p302_p1 }
   0x5   : > { %p356_p3 = scmp.lt.s32.totalorder (!%p303_p2), %s722_s28, 1  ;;  %s831_s17 = smov (!%p303_p2), 4  }
   0x6   : > { %306 = sbr.rel (%p303_p2) target bundleno = 714 (0x2ca), region = 52  ;;  %s832_s18 = smov (!%p303_p2), 8  }
   0xb   : > { %s957_s28 = smov (!%p356_p3, %s722_s28), 1  ;;  %vm404_vm0 = vcmask 130048   ;;  %v756_v20 = vld [vmem:[%s952_s5] sm:$0xf]  ;;  %v796_v21 = vld [vmem:[%s952_s5] sm:$0x30] }
   0xc   : > { %s787_s29 = sshll.u32 %s957_s28, 3  ;;  %v757_v22 = vor.u32 %v796_v21, %v756_v20  ;;  %vm508_vm1 = vcmask 1045504   ;;  %v801_v24 = vld [vmem:[%s953_s6 + $0x20] sm:$0xff]  ;;  %v800_v25 = vld [vmem:[%s953_s6 + $0x18] sm:$0xff]  ;;  %vm486_vm2 = vcmask 31744   ;;  %vm489_vm3 = vcmask 64512  }
   0xd   : > { %s360_s10 = scalar_lea.vmem %s947_s0, %s787_s29  ;;  %s375_s13 = scalar_lea.vmem %s950_s3, %s787_s29  ;;  %606 = vmatpush.bf16.msra.mxu1 %v801_v24  ;;  %vm504_vm4 = vcmask 97280   ;;  %v761_v37 = vld [vmem:[%s954_s7] sm:$0xf]  ;;  %v802_v38 = vld [vmem:[%s954_s7] sm:$0x10]  ;;  %v799_v42 = vld [vmem:[%s953_s6 + $0x10] sm:$0xff] }
   0xe   : > { %v793_v0 = vld [vmem:[%s360_s10] sm:$0xff]  ;;  %s380_s16 = scalar_lea.vmem %s951_s4, %s787_s29  ;;  %v510_v23 = vsel %vm508_vm1, %v757_v22, 0  ;;  %s913_s29 = sshll.u32 %s957_s28, 4  ;;  %v762_v39 = vor.u32 %v802_v38, %v761_v37  ;;  %vm551_vm5 = vcmask 1044480   ;;  %v798_v44 = vld [vmem:[%s953_s6 + $0x8] sm:$0xff]  ;;  %vm547_vm6 = vcmask 80896  }
   0xf   : > { %v794_v1 = vld [vmem:[%s375_s13] sm:$0xff]  ;;  %437 = vmatpush.bf16.msra.mxu2 %v793_v0  ;;  %415 = vmatpush.bf16.msra.mxu0 %v793_v0  ;;  %s365_s10 = scalar_lea.vmem %s948_s1, %s913_s29  ;;  %s370_s22 = scalar_lea.vmem %s949_s2, %s913_s29  ;;  %vm599_vm7 = vcmask 654336  }
  0x10   : > { %v795_v2 = vld [vmem:[%s380_s16] sm:$0xff]  ;;  %519 = vmatpush.bf16.msra.mxu3 %v510_v23  ;;  %v494_v41 = vld [vmem:[%s365_s10 + $0x8] sm:$0xff]  ;;  %v553_v43 = vsel %vm551_vm5, %v762_v39, 0  ;;  %s385_s25 = scalar_lea.vmem %s955_s8, %s913_s29 }
  0x11   : > { %607 = vmatpush.bf16.msra.mxu1 %v800_v25  ;;  %v493_v40 = vld [vmem:[%s365_s10] sm:$0xff]  ;;  %v496_v49 = vld [vmem:[%s370_s22 + $0x8] sm:$0xff] }
  0x12   : > { %752 = vmatmul.msk.bf16.vlgmr.msra.gmra.mxu2 %vm404_vm0, %v794_v1  ;;  %747 = vmatmul.msk.bf16.vlgmr.msra.gmra.mxu0 %vm404_vm0, %v795_v2  ;;  %v539_v45 = vpack.c.bf16 %v494_v41, %v493_v40  ;;  %v797_v46 = vld [vmem:[%s953_s6] sm:$0xff] }
  0x13   : > { %562 = vmatpush.bf16.msrb.mxu0 %v553_v43  ;;  %v495_v48 = vld [vmem:[%s370_s22] sm:$0xff] }
  0x15   : > { %608 = vmatpush.bf16.msra.mxu1 %v799_v42 }
  0x19   : > { %609 = vmatpush.bf16.msra.mxu1 %v798_v44 }
  0x1d   : > { %610 = vmatpush.bf16.msra.mxu1 %v797_v46 }
  0x22   : > { %763 = vmatmul.msk.bf16.vlgmr.msrb.gmra.mxu0 %vm547_vm6, %v539_v45 }
  0x8f   : > { %v417_v11 = vpop.f32.mrf.mxu0 }
  0x95   : > { %v439_v3 = vpop.f32.mrf.mxu2 }
  0x96   : > { %v444_v4 = vpack.c.bf16 %v439_v3, %v439_v3 }
  0x97   : > { %v419_v16 = vpop.f32.mrf.mxu0 }
  0x98   : > { %v448_v8 = vunpack.c.l.b16 %v444_v4 }
  0x9d   : > { %v441_v5 = vpop.f32.mrf.mxu2 }
  0x9e   : > { %v445_v6 = vpack.c.bf16 %v441_v5, %v441_v5  ;;  %v813_v7 = vpack.i.bf16 %v441_v5, %v439_v3 }
  0x9f   : > { %v564_v54 = vpop.f32.mrf.mxu0 }
  0xa0   : > { %v449_v9 = vunpack.c.l.b16 %v445_v6  ;;  %814 = vrot.lane.b32.xlu0 %v813_v7, %s831_s17 }
  0xa2   : > { %v450_v10 = vpack.c.b16 %v449_v9, %v448_v8 }
  0xa4   : > { %459 = vmatpush.bf16.msrb.mxu2 %v450_v10 }
  0xa7   : > { %753 = vmatmul.msk.bf16.vlgmr.msrb.gmra.mxu2 %vm404_vm0, %v794_v1  ;;  %v566_v57 = vpop.f32.mrf.mxu0 }
 0x112   : > { %v815_v26 = vpop.permute.xlu0 %814 }
 0x113   : > { %v817_v27 = vunpack.i.h.bf16 %v815_v26  ;;  %v816_v28 = vunpack.i.l.bf16 %v815_v26 }
 0x115   : > { %v487_v32 = vsel %vm486_vm2, %v417_v11, %v816_v28  ;;  %v488_v33 = vsel %vm486_vm2, %v419_v16, %v817_v27 }
 0x12a   : > { %v461_v12 = vpop.f32.mrf.mxu2 }
 0x12b   : > { %v466_v13 = vmul.f32 2.0, %v461_v12 }
 0x12d   : > { %v468_v17 = vsub.f32 %v466_v13, %v417_v11 }
 0x132   : > { %v463_v14 = vpop.f32.mrf.mxu2 }
 0x133   : > { %v467_v15 = vmul.f32 2.0, %v463_v14 }
 0x135   : > { %v469_v18 = vsub.f32 %v467_v15, %v419_v16 }
 0x137   : > { %v818_v19 = vpack.i.bf16 %v469_v18, %v468_v17 }
 0x139   : > { %819 = vrot.lane.b32.xlu0 %v818_v19, %s832_s18 }
 0x1ab   : > { %v820_v29 = vpop.permute.xlu0 %819 }
 0x1ac   : > { %v822_v30 = vunpack.i.h.bf16 %v820_v29  ;;  %v821_v31 = vunpack.i.l.bf16 %v820_v29 }
 0x1ae   : > { %v490_v34 = vsel %vm489_vm3, %v487_v32, %v821_v31  ;;  %v491_v35 = vsel %vm489_vm3, %v488_v33, %v822_v30 }
 0x1af   : > { %v492_v36 = vpack.c.bf16 %v491_v35, %v490_v34 }
 0x1b1   : > { %758 = vmatmul.msk.bf16.vlgmr.msra.gmra.mxu3 %vm504_vm4, %v492_v36 }
 0x234   : > { %v521_v47 = vpop.f32.mrf.mxu3 }
 0x235   : > { %v526_v51 = vmul.f32 %v521_v47, %v495_v48 }
 0x23c   : > { %v523_v50 = vpop.f32.mrf.mxu3 }
 0x23d   : > { %v527_v52 = vmul.f32 %v523_v50, %v496_v49 }
 0x23f   : > { %v528_v53 = vpack.c.bf16 %v527_v52, %v526_v51 }
 0x241   : > { %784 = vmatmul.msk.bf16.vlgmr.msra.gmra.mxu1 %vm599_vm7, %v528_v53 }
 0x2be   : > { %v612_v55 = vpop.f32.mrf.mxu1 }
 0x2bf   : > { %v613_v56 = vadd.f32 %v612_v55, %v564_v54 }
 0x2c1   : > { %617 = vst.msk [vmem:[%s385_s25] sm:$0xff] %vm489_vm3, %v613_v56 }
 0x2c6   : > { %v614_v58 = vpop.f32.mrf.mxu1 }
 0x2c7   : > { %v615_v59 = vadd.f32 %v614_v58, %v566_v57 }
 0x2c9   : > { %618 = vst.msk [vmem:[%s385_s25 + $0x8] sm:$0xff] %vm489_vm3, %v615_v59 }
 0x2ca PF: > { %s18_s27 = sadd.s32 1, %s829_s27  }
 0x2cb   : > { %p15_p4 = scmp.ge.s32.totalorder %s18_s27, 4  }
 0x2cd   :  { %17 = sbr.rel (!%p15_p4) target bundleno = 1 (0x1), region = 94 }

</bundles_post_ra>
